<compile_context>
chip_gen: v6e
topology: v6e:2x2x1
jax: 0.10.0
libtpu: 0.0.40
codegen_flags: <defaults>
</compile_context>

<pallas_src>
import functools

import jax
import jax.numpy as jnp
from jax import lax
from jax.experimental import pallas as pl
from jax.experimental.pallas import tpu as pltpu


def _round_up(a: int, b: int) -> int:
    return (a + b - 1) // b * b


def _chip_config():
    """Return (vmem_budget_bytes, tensorcores_per_chip) for the local TPU generation."""
    vmem_cap = None
    try:
        vmem_cap = int(pltpu.get_tpu_info().vmem_capacity_bytes)
    except Exception:
        vmem_cap = None
    kind = ""
    try:
        kind = jax.devices()[0].device_kind.lower()
    except Exception:
        pass
    if vmem_cap is None:
        if "v7" in kind or "7x" in kind:
            vmem_cap = 64 * 1024 * 1024
        elif "v5" in kind or "v6" in kind:
            vmem_cap = 128 * 1024 * 1024
        else:
            vmem_cap = 64 * 1024 * 1024   # conservative fallback for unknown chips
    cores = 2 if ("v7" in kind or "7x" in kind) else 1
    budget = int(vmem_cap * 0.80)          # leave headroom below physical VMEM
    return budget, cores


def _plan_tiles(M, C, H, x_bytes, w_bytes, tm_req, th_req):
    """Pick (tm, th, vmem_limit) that fit this chip's VMEM budget."""
    budget, cores = _chip_config()
    sub = max(8, 32 // max(1, x_bytes))    # packed sublane multiple for the x/out dtype
    Cp = _round_up(C, 128)

    tm_max = min(tm_req or 1024, _round_up(M, sub))
    if cores > 1 and M >= 2 * sub:
        # keep >= 2 M tiles so the "parallel" axis occupies every TensorCore (v7x)
        tm_max = min(tm_max, _round_up(-(-M // cores), sub))
    th_default = 1024 if budget >= 80 * 1024 * 1024 else 512
    th_max = min(th_req or th_default, _round_up(H, 128))

    def fits(tm, th):
        hp = _round_up(H, th)
        need = (4 * tm * Cp * x_bytes      # x + out tiles, double-buffered
                + 4 * th * Cp * w_bytes    # W1 + W2 tiles, double-buffered
                + 4 * tm * Cp              # f32 accumulator scratch
                + 8 * tm * th              # h / g f32 intermediates
                + 8 * hp + 8 * Cp)         # resident biases
        return need <= budget

    tm_cands, t = [], tm_max
    while t >= sub:
        tm_cands.append(t)
        t = _round_up(t // 2, sub) if t > sub else 0
    th_cands, t = [], th_max
    while t >= 128:
        th_cands.append(t)
        t = _round_up(t // 2, 128) if t > 128 else 0

    for tm in tm_cands:        # prefer the biggest tm (amortizes weight HBM traffic)
        for th in th_cands:    # then the biggest th that fits (fewer grid steps)
            if fits(tm, th):
                return tm, th, budget
    return tm_cands[-1], th_cands[-1], budget


def _mlp_kernel(x_ref, w1_ref, b1_ref, w2t_ref, b2_ref, o_ref, acc_ref):
    # x_ref:   (tm, Cp)       token tile (native dtype)
    # w1_ref:  (th, Cp)       c_fc weight tile, torch (out, in) layout -> NT contraction
    # b1_ref:  (Hp//th, th)   resident c_fc bias; row j = bias slice of hidden tile j
    # w2t_ref: (th, Cp)       c_proj weight tile, pre-transposed -> canonical matmul
    # b2_ref:  (1, Cp)        resident c_proj bias
    # o_ref:   (tm, Cp)       output tile (resident across the H axis)
    # acc_ref: (tm, Cp)       f32 accumulator scratch
    j = pl.program_id(1)

    @pl.when(j == 0)
    def _():
        acc_ref[...] = jnp.zeros_like(acc_ref)

    # h = x @ W1^T + b1 : contract the shared C dim (torch (out, in) layout).
    h = lax.dot_general(
        x_ref[...], w1_ref[...],
        dimension_numbers=(((1,), (1,)), ((), ())),
        preferred_element_type=jnp.float32,
    )
    h = h + b1_ref[pl.ds(j, 1), :].astype(jnp.float32)

    # GELU, tanh approximation (matches nn.GELU(approximate='tanh')), in f32.
    c = 0.7978845608028654  # sqrt(2/pi)
    g = 0.5 * h * (1.0 + jnp.tanh(c * (h + 0.044715 * (h * h * h))))

    # Accumulate g @ W2^T for this H tile; canonical (tm,th)@(th,Cp) MXU feed in the
    # weight dtype, f32 accumulation.
    acc_ref[...] += jnp.dot(g.astype(w2t_ref.dtype), w2t_ref[...],
                            preferred_element_type=jnp.float32)

    @pl.when(j == pl.num_programs(1) - 1)
    def _():
        o_ref[...] = (acc_ref[...] + b2_ref[...].astype(jnp.float32)).astype(o_ref.dtype)


@functools.partial(jax.jit,
                   static_argnames=("tm", "th", "vmem_limit", "cast_to_bf16"))
def _mlp_pallas_impl(x, w_fc, b_fc, w_proj_t, b_proj, *, tm, th, vmem_limit,
                     cast_to_bf16):
    B, T, C = x.shape
    H = w_fc.shape[0]          # 4*C
    M = B * T
    out_dtype = x.dtype

    if cast_to_bf16 and x.dtype == jnp.float32:
        x = x.astype(jnp.bfloat16)
        w_fc = w_fc.astype(jnp.bfloat16)
        w_proj_t = w_proj_t.astype(jnp.bfloat16)

    Mp = _round_up(M, tm)
    Cp = _round_up(C, 128)
    Hp = _round_up(H, th)

    x2d = x.reshape(M, C)
    if Mp != M or Cp != C:
        x2d = jnp.pad(x2d, ((0, Mp - M), (0, Cp - C)))
    w1 = w_fc
    w2t = w_proj_t
    if Hp != H or Cp != C:
        w1 = jnp.pad(w_fc, ((0, Hp - H), (0, Cp - C)))
        w2t = jnp.pad(w_proj_t, ((0, Hp - H), (0, Cp - C)))
    b1 = b_fc if Hp == H else jnp.pad(b_fc, (0, Hp - H))
    b2 = b_proj if Cp == C else jnp.pad(b_proj, (0, Cp - C))
    b1 = b1.reshape(Hp // th, th)   # row j = bias slice for hidden tile j (resident)
    b2 = b2.reshape(1, Cp)

    m_tiles = Mp // tm
    nbytes = lambda a: a.size * a.dtype.itemsize
    cost = pl.CostEstimate(
        flops=2 * 2 * Mp * Cp * Hp,                      # two matmuls
        transcendentals=Mp * Hp,                         # tanh in GELU
        bytes_accessed=(nbytes(x2d) + Mp * Cp * out_dtype.itemsize
                        + m_tiles * (nbytes(w1) + nbytes(w2t)
                                     + nbytes(b1) + nbytes(b2))),
    )

    out2d = pl.pallas_call(
        _mlp_kernel,
        out_shape=jax.ShapeDtypeStruct((Mp, Cp), out_dtype),
        grid_spec=pltpu.PrefetchScalarGridSpec(
            num_scalar_prefetch=0,
            grid=(m_tiles, Hp // th),
            in_specs=[
                pl.BlockSpec((tm, Cp), lambda i, j: (i, 0)),         # x tile
                pl.BlockSpec((th, Cp), lambda i, j: (j, 0)),         # W1 tile (H rows)
                pl.BlockSpec((Hp // th, th), lambda i, j: (0, 0)),   # b1 (resident)
                pl.BlockSpec((th, Cp), lambda i, j: (j, 0)),         # W2^T tile (H rows)
                pl.BlockSpec((1, Cp), lambda i, j: (0, 0)),          # b2 (resident)
            ],
            out_specs=pl.BlockSpec((tm, Cp), lambda i, j: (i, 0)),
            scratch_shapes=[pltpu.VMEM((tm, Cp), jnp.float32)],
        ),
        compiler_params=pltpu.CompilerParams(
            dimension_semantics=("parallel", "arbitrary"),
            vmem_limit_bytes=vmem_limit,
        ),
        cost_estimate=cost,
    )(x2d, w1, b1, w2t, b2)

    return out2d[:M, :C].reshape(B, T, C)


def mlp_pallas(x, w_fc, b_fc, w_proj, b_proj, *, tm=None, th=None,
               cast_to_bf16=False):
    """x: (B, T, C).  w_fc: (4C, C), w_proj: (C, 4C) in torch (out, in) layout."""
    B, T, C = x.shape
    H = w_fc.shape[0]
    M = B * T
    x_bytes = 2 if (cast_to_bf16 and x.dtype == jnp.float32) else x.dtype.itemsize
    w_bytes = 2 if (cast_to_bf16 and w_fc.dtype == jnp.float32) else w_fc.dtype.itemsize
    tm_e, th_e, vmem_limit = _plan_tiles(M, C, H, x_bytes, w_bytes, tm, th)

    # Pre-transpose c_proj to (H, C) so the second matmul is a canonical
    # (tm,th)@(th,Cp) MXU feed with contiguous-row weight DMAs.  In a real model this
    # would be done once at weight-load time; here it is a one-off op outside the jit.
    w_proj_t = jnp.swapaxes(w_proj, 0, 1)

    return _mlp_pallas_impl(x, w_fc, b_fc, w_proj_t, b_proj,
                            tm=tm_e, th=th_e, vmem_limit=vmem_limit,
                            cast_to_bf16=cast_to_bf16)


def mlp_reference(x, w_fc, b_fc, w_proj, b_proj):
    h = jnp.einsum("btc,hc->bth", x, w_fc) + b_fc
    g = jax.nn.gelu(h, approximate=True)
    return jnp.einsum("bth,ch->btc", g, w_proj) + b_proj


if __name__ == "__main__":
    key = jax.random.PRNGKey(0)
    B, T, n_embed = 2, 8, 32
    hidden = 4 * n_embed  # 128

    k1, k2, k3, k4, k5 = jax.random.split(key, 5)
    x = jax.random.normal(k1, (B, T, n_embed), dtype=jnp.float32)
    # PyTorch nn.Linear weight layout: (out_features, in_features)
    w_fc = jax.random.normal(k2, (hidden, n_embed), dtype=jnp.float32) * 0.02
    b_fc = jax.random.normal(k3, (hidden,), dtype=jnp.float32) * 0.02
    w_proj = jax.random.normal(k4, (n_embed, hidden), dtype=jnp.float32) * 0.02
    b_proj = jax.random.normal(k5, (n_embed,), dtype=jnp.float32) * 0.02

    out = mlp_pallas(x, w_fc, b_fc, w_proj, b_proj)
    jax.block_until_ready(out)

    ref = mlp_reference(x, w_fc, b_fc, w_proj, b_proj)
    assert out.shape == (B, T, n_embed)
    assert jnp.allclose(out, ref, atol=1e-4, rtol=1e-4), "mismatch vs reference"

    print("KERNEL_OK")
</pallas_src>

<mosaic_0001>
module attributes {stable_mosaic.version = 11 : i64} {
  func.func @_mlp_kernel(%arg0: i32, %arg1: i32, %arg2: memref<16x128xf32, #tpu.memory_space<vmem>>, %arg3: memref<128x128xf32, #tpu.memory_space<vmem>>, %arg4: memref<1x128xf32, #tpu.memory_space<vmem>>, %arg5: memref<128x128xf32, #tpu.memory_space<vmem>>, %arg6: memref<1x128xf32, #tpu.memory_space<vmem>>, %arg7: memref<16x128xf32, #tpu.memory_space<vmem>>, %arg8: memref<16x128xf32, #tpu.memory_space<vmem>>) attributes {dimension_semantics = [#tpu.dimension_semantics<parallel>, #tpu.dimension_semantics<arbitrary>], iteration_bounds = array<i64: 1, 1>, scalar_prefetch = 0 : i64, scratch_operands = 1 : i64, tpu.core_type = #tpu.core_type<tc>, window_params = [{transform_indices = @transform_0, window_bounds = array<i64: 16, 128>}, {transform_indices = @transform_1, window_bounds = array<i64: 128, 128>}, {pipeline_mode = #tpu.pipeline_mode<synchronous>, transform_indices = @transform_2, window_bounds = array<i64: 1, 128>}, {transform_indices = @transform_3, window_bounds = array<i64: 128, 128>}, {pipeline_mode = #tpu.pipeline_mode<synchronous>, transform_indices = @transform_4, window_bounds = array<i64: 1, 128>}, {transform_indices = @transform_5, window_bounds = array<i64: 16, 128>}]} {
    %c0_i32 = arith.constant 0 : i32
    %0 = arith.cmpi eq, %arg1, %c0_i32 : i32
    %1 = arith.extui %0 : i1 to i32
    %c0_i32_0 = arith.constant 0 : i32
    %2 = arith.cmpi ne, %1, %c0_i32_0 : i32
    scf.if %2 {
      %cst_18 = arith.constant 0.000000e+00 : f32
      %31 = vector.broadcast %cst_18 : f32 to vector<16x128xf32>
      %c0_19 = arith.constant 0 : index
      %c0_20 = arith.constant 0 : index
      %32 = vector.load %arg8[%c0_19, %c0_20] : memref<16x128xf32, #tpu.memory_space<vmem>>, vector<16x128xf32>
      tpu.vector_store %arg8[%c0_19, %c0_20], %31 {strides = array<i32>} : memref<16x128xf32, #tpu.memory_space<vmem>>, vector<16x128xf32>,
    } else {
    }
    %c0 = arith.constant 0 : index
    %c0_1 = arith.constant 0 : index
    %3 = vector.load %arg2[%c0, %c0_1] : memref<16x128xf32, #tpu.memory_space<vmem>>, vector<16x128xf32>
    %c0_2 = arith.constant 0 : index
    %c0_3 = arith.constant 0 : index
    %4 = vector.load %arg3[%c0_2, %c0_3] : memref<128x128xf32, #tpu.memory_space<vmem>>, vector<128x128xf32>
    %cst = arith.constant dense<0.000000e+00> : vector<16x128xf32>
    %5 = tpu.matmul %3, %4, %cst {dimension_numbers = #tpu.dot_dimension_numbers<[1], [1], [0], [0], [0, 0, 1, 0], [], []>} : vector<16x128xf32>, vector<128x128xf32>, vector<16x128xf32> -> vector<16x128xf32>
    %6 = arith.index_cast %arg1 : i32 to index
    %c0_4 = arith.constant 0 : index
    %7 = vector.load %arg4[%6, %c0_4] : memref<1x128xf32, #tpu.memory_space<vmem>>, vector<1x128xf32>
    %8 = vector.broadcast %7 : vector<1x128xf32> to vector<16x128xf32>
    %9 = arith.addf %5, %8 : vector<16x128xf32>
    %cst_5 = arith.constant 5.000000e-01 : f32
    %10 = vector.broadcast %cst_5 : f32 to vector<16x128xf32>
    %11 = arith.mulf %10, %9 : vector<16x128xf32>
    %12 = arith.mulf %9, %9 : vector<16x128xf32>
    %13 = arith.mulf %12, %9 : vector<16x128xf32>
    %cst_6 = arith.constant 4.471500e-02 : f32
    %14 = vector.broadcast %cst_6 : f32 to vector<16x128xf32>
    %15 = arith.mulf %14, %13 : vector<16x128xf32>
    %16 = arith.addf %9, %15 : vector<16x128xf32>
    %cst_7 = arith.constant 0.797884583 : f32
    %17 = vector.broadcast %cst_7 : f32 to vector<16x128xf32>
    %18 = arith.mulf %17, %16 : vector<16x128xf32>
    %19 = math.tanh %18 : vector<16x128xf32>
    %cst_8 = arith.constant 1.000000e+00 : f32
    %20 = vector.broadcast %cst_8 : f32 to vector<16x128xf32>
    %21 = arith.addf %20, %19 : vector<16x128xf32>
    %22 = arith.mulf %11, %21 : vector<16x128xf32>
    %c0_9 = arith.constant 0 : index
    %c0_10 = arith.constant 0 : index
    %23 = vector.load %arg8[%c0_9, %c0_10] : memref<16x128xf32, #tpu.memory_space<vmem>>, vector<16x128xf32>
    %c0_11 = arith.constant 0 : index
    %c0_12 = arith.constant 0 : index
    %24 = vector.load %arg5[%c0_11, %c0_12] : memref<128x128xf32, #tpu.memory_space<vmem>>, vector<128x128xf32>
    %cst_13 = arith.constant dense<0.000000e+00> : vector<16x128xf32>
    %25 = tpu.matmul %22, %24, %cst_13 {dimension_numbers = #tpu.dot_dimension_numbers<[1], [0], [0], [1], [0, 0, 1, 1], [], []>} : vector<16x128xf32>, vector<128x128xf32>, vector<16x128xf32> -> vector<16x128xf32>
    %26 = arith.addf %23, %25 : vector<16x128xf32>
    %c0_14 = arith.constant 0 : index
    %c0_15 = arith.constant 0 : index
    %27 = vector.load %arg8[%c0_14, %c0_15] : memref<16x128xf32, #tpu.memory_space<vmem>>, vector<16x128xf32>
    tpu.vector_store %arg8[%c0_14, %c0_15], %26 {strides = array<i32>} : memref<16x128xf32, #tpu.memory_space<vmem>>, vector<16x128xf32>,
    %c0_i32_16 = arith.constant 0 : i32
    %28 = arith.cmpi eq, %arg1, %c0_i32_16 : i32
    %29 = arith.extui %28 : i1 to i32
    %c0_i32_17 = arith.constant 0 : i32
    %30 = arith.cmpi ne, %29, %c0_i32_17 : i32
    scf.if %30 {
      %c0_18 = arith.constant 0 : index
      %c0_19 = arith.constant 0 : index
      %31 = vector.load %arg8[%c0_18, %c0_19] : memref<16x128xf32, #tpu.memory_space<vmem>>, vector<16x128xf32>
      %c0_20 = arith.constant 0 : index
      %c0_21 = arith.constant 0 : index
      %32 = vector.load %arg6[%c0_20, %c0_21] : memref<1x128xf32, #tpu.memory_space<vmem>>, vector<1x128xf32>
      %33 = vector.broadcast %32 : vector<1x128xf32> to vector<16x128xf32>
      %34 = arith.addf %31, %33 : vector<16x128xf32>
      %c0_22 = arith.constant 0 : index
      %c0_23 = arith.constant 0 : index
      %35 = vector.load %arg7[%c0_22, %c0_23] : memref<16x128xf32, #tpu.memory_space<vmem>>, vector<16x128xf32>
      tpu.vector_store %arg7[%c0_22, %c0_23], %34 {strides = array<i32>} : memref<16x128xf32, #tpu.memory_space<vmem>>, vector<16x128xf32>,
    } else {
    }
    return
  }
  func.func @transform_0(%arg0: i32, %arg1: i32) -> (i32, i32) {
    %c0_i32 = arith.constant 0 : i32
    %c0_i32_0 = arith.constant 0 : i32
    return %arg0, %c0_i32 : i32, i32
  }
  func.func @transform_1(%arg0: i32, %arg1: i32) -> (i32, i32) {
    %c0_i32 = arith.constant 0 : i32
    %c0_i32_0 = arith.constant 0 : i32
    return %arg1, %c0_i32 : i32, i32
  }
  func.func @transform_2(%arg0: i32, %arg1: i32) -> (i32, i32) {
    %c0_i32 = arith.constant 0 : i32
    %c0_i32_0 = arith.constant 0 : i32
    %c0_i32_1 = arith.constant 0 : i32
    return %c0_i32, %c0_i32_0 : i32, i32
  }
  func.func @transform_3(%arg0: i32, %arg1: i32) -> (i32, i32) {
    %c0_i32 = arith.constant 0 : i32
    %c0_i32_0 = arith.constant 0 : i32
    return %arg1, %c0_i32 : i32, i32
  }
  func.func @transform_4(%arg0: i32, %arg1: i32) -> (i32, i32) {
    %c0_i32 = arith.constant 0 : i32
    %c0_i32_0 = arith.constant 0 : i32
    %c0_i32_1 = arith.constant 0 : i32
    return %c0_i32, %c0_i32_0 : i32, i32
  }
  func.func @transform_5(%arg0: i32, %arg1: i32) -> (i32, i32) {
    %c0_i32 = arith.constant 0 : i32
    %c0_i32_0 = arith.constant 0 : i32
    return %arg0, %c0_i32 : i32, i32
  }
}

</mosaic_0001>

<bundles_post_ra>
// kernel: _mlp_pallas_impl.1
= control target key start
LH: loop header
LB: loop body
LE: loop exit
PB: predicated region body
PF: predicated region fallthrough
CT: control target
= control target key end

     0   :  { %s517_s1 = inlined_call_operand.vmem [shape: f32[128,128], index: 1, kind: input, shape index: {}]   ;;  %s518_s0 = inlined_call_operand.vmem [shape: f32[16,128], index: 0, kind: input, shape index: {}]   ;;  %s519_s3 = inlined_call_operand.vmem [shape: f32[128,128], index: 3, kind: input, shape index: {}]   ;;  %s520_s2 = inlined_call_operand.vmem [shape: f32[1,128], index: 2, kind: input, shape index: {}]   ;;  %s521_s4 = inlined_call_operand.vmem [shape: f32[1,128], index: 4, kind: input, shape index: {}]   ;;  %s522_s5 = inlined_call_operand.vmem [shape: f32[16,128], index: 5, kind: output, shape index: {}]  }
   0x1   :  { %v43_v0 = vld [vmem:[%s517_s1 + $0x78] sm:$0xff]  ;;  %v42_v1 = vld [vmem:[%s517_s1 + $0x70] sm:$0xff]  ;;  %v41_v2 = vld [vmem:[%s517_s1 + $0x68] sm:$0xff] }
   0x2   :  { %299 = vmatprep.subr.mxu0 %v43_v0  ;;  %v26_v3 = vld [vmem:[%s518_s0] sm:$0xff]  ;;  %v39_v5 = vld [vmem:[%s517_s1 + $0x58] sm:$0xff]  ;;  %v38_v6 = vld [vmem:[%s517_s1 + $0x50] sm:$0xff] }
   0x3   :  { %300 = vmatpush3.xpose.msra.mxu0 %v43_v0  ;;  %331 = vmatprep.mubr.f32.mxu0 %v26_v3  ;;  %v40_v4 = vld [vmem:[%s517_s1 + $0x60] sm:$0xff]  ;;  %v37_v7 = vld [vmem:[%s517_s1 + $0x48] sm:$0xff]  ;;  %v35_v9 = vld [vmem:[%s517_s1 + $0x38] sm:$0xff] }
   0x4   :  { %301 = vmatprep.subr.mxu0 %v42_v1  ;;  %v36_v8 = vld [vmem:[%s517_s1 + $0x40] sm:$0xff]  ;;  %v34_v10 = vld [vmem:[%s517_s1 + $0x30] sm:$0xff]  ;;  %v33_v11 = vld [vmem:[%s517_s1 + $0x28] sm:$0xff] }
   0x5   :  { %v32_v12 = vld [vmem:[%s517_s1 + $0x20] sm:$0xff]  ;;  %v31_v13 = vld [vmem:[%s517_s1 + $0x18] sm:$0xff]  ;;  %v30_v14 = vld [vmem:[%s517_s1 + $0x10] sm:$0xff] }
   0x6   :  { %v29_v15 = vld [vmem:[%s517_s1 + $0x8] sm:$0xff]  ;;  %v28_v16 = vld [vmem:[%s517_s1] sm:$0xff]  ;;  %v161_v18 = vld [vmem:[%s519_s3 + $0x78] sm:$0xff] }
   0x7   :  { %302 = vmatpush3.xpose.msra.mxu0 %v42_v1  ;;  %v27_v17 = vld [vmem:[%s518_s0 + $0x8] sm:$0xff]  ;;  %334 = vmatprep.subr.mxu1 %v161_v18  ;;  %v160_v19 = vld [vmem:[%s519_s3 + $0x70] sm:$0xff]  ;;  %v158_v21 = vld [vmem:[%s519_s3 + $0x60] sm:$0xff] }
   0x8   :  { %303 = vmatprep.subr.mxu0 %v41_v2  ;;  %335 = vmatpush3.msra.mxu1 %v161_v18  ;;  %v159_v20 = vld [vmem:[%s519_s3 + $0x68] sm:$0xff]  ;;  %v157_v22 = vld [vmem:[%s519_s3 + $0x58] sm:$0xff]  ;;  %v156_v23 = vld [vmem:[%s519_s3 + $0x50] sm:$0xff] }
   0x9   :  { %336 = vmatprep.subr.mxu1 %v160_v19  ;;  %v155_v24 = vld [vmem:[%s519_s3 + $0x48] sm:$0xff]  ;;  %v154_v25 = vld [vmem:[%s519_s3 + $0x40] sm:$0xff]  ;;  %v153_v26 = vld [vmem:[%s519_s3 + $0x38] sm:$0xff] }
   0xa   :  { %337 = vmatpush3.msra.mxu1 %v160_v19  ;;  %v152_v27 = vld [vmem:[%s519_s3 + $0x30] sm:$0xff]  ;;  %v151_v28 = vld [vmem:[%s519_s3 + $0x28] sm:$0xff]  ;;  %v150_v29 = vld [vmem:[%s519_s3 + $0x20] sm:$0xff] }
   0xb   :  { %304 = vmatpush3.xpose.msra.mxu0 %v41_v2  ;;  %338 = vmatprep.subr.mxu1 %v159_v20  ;;  %v149_v30 = vld [vmem:[%s519_s3 + $0x18] sm:$0xff]  ;;  %v148_v31 = vld [vmem:[%s519_s3 + $0x10] sm:$0xff]  ;;  %v147_v32 = vld [vmem:[%s519_s3 + $0x8] sm:$0xff] }
   0xc   :  { %305 = vmatprep.subr.mxu0 %v40_v4  ;;  %339 = vmatpush3.msra.mxu1 %v159_v20  ;;  %v146_v33 = vld [vmem:[%s519_s3] sm:$0xff] }
   0xd   :  { %340 = vmatprep.subr.mxu1 %v158_v21  ;;  %v261_v34 = vld [vmem:[%s520_s2] ss:$0 sm:$0xff] }
   0xe   :  { %341 = vmatpush3.msra.mxu1 %v158_v21  ;;  %v262_v57 = vld [vmem:[%s521_s4] ss:$0 sm:$0xff] }
   0xf   :  { %306 = vmatpush3.xpose.msra.mxu0 %v40_v4  ;;  %342 = vmatprep.subr.mxu1 %v157_v22 }
  0x10   :  { %307 = vmatprep.subr.mxu0 %v39_v5  ;;  %343 = vmatpush3.msra.mxu1 %v157_v22 }
  0x11   :  { %344 = vmatprep.subr.mxu1 %v156_v23 }
  0x12   :  { %345 = vmatpush3.msra.mxu1 %v156_v23 }
  0x13   :  { %308 = vmatpush3.xpose.msra.mxu0 %v39_v5  ;;  %346 = vmatprep.subr.mxu1 %v155_v24 }
  0x14   :  { %309 = vmatprep.subr.mxu0 %v38_v6  ;;  %347 = vmatpush3.msra.mxu1 %v155_v24 }
  0x15   :  { %348 = vmatprep.subr.mxu1 %v154_v25 }
  0x16   :  { %349 = vmatpush3.msra.mxu1 %v154_v25 }
  0x17   :  { %310 = vmatpush3.xpose.msra.mxu0 %v38_v6  ;;  %350 = vmatprep.subr.mxu1 %v153_v26 }
  0x18   :  { %311 = vmatprep.subr.mxu0 %v37_v7  ;;  %351 = vmatpush3.msra.mxu1 %v153_v26 }
  0x19   :  { %352 = vmatprep.subr.mxu1 %v152_v27 }
  0x1a   :  { %353 = vmatpush3.msra.mxu1 %v152_v27 }
  0x1b   :  { %312 = vmatpush3.xpose.msra.mxu0 %v37_v7  ;;  %354 = vmatprep.subr.mxu1 %v151_v28 }
  0x1c   :  { %313 = vmatprep.subr.mxu0 %v36_v8  ;;  %355 = vmatpush3.msra.mxu1 %v151_v28 }
  0x1d   :  { %356 = vmatprep.subr.mxu1 %v150_v29 }
  0x1e   :  { %357 = vmatpush3.msra.mxu1 %v150_v29 }
  0x1f   :  { %314 = vmatpush3.xpose.msra.mxu0 %v36_v8  ;;  %358 = vmatprep.subr.mxu1 %v149_v30 }
  0x20   :  { %315 = vmatprep.subr.mxu0 %v35_v9  ;;  %359 = vmatpush3.msra.mxu1 %v149_v30 }
  0x21   :  { %360 = vmatprep.subr.mxu1 %v148_v31 }
  0x22   :  { %361 = vmatpush3.msra.mxu1 %v148_v31 }
  0x23   :  { %316 = vmatpush3.xpose.msra.mxu0 %v35_v9  ;;  %362 = vmatprep.subr.mxu1 %v147_v32 }
  0x24   :  { %317 = vmatprep.subr.mxu0 %v34_v10  ;;  %363 = vmatpush3.msra.mxu1 %v147_v32 }
  0x25   :  { %364 = vmatprep.subr.mxu1 %v146_v33 }
  0x26   :  { %365 = vmatpush3.msra.mxu1 %v146_v33 }
  0x27   :  { %318 = vmatpush3.xpose.msra.mxu0 %v34_v10 }
  0x28   :  { %319 = vmatprep.subr.mxu0 %v33_v11 }
  0x2b   :  { %320 = vmatpush3.xpose.msra.mxu0 %v33_v11 }
  0x2c   :  { %321 = vmatprep.subr.mxu0 %v32_v12 }
  0x2f   :  { %322 = vmatpush3.xpose.msra.mxu0 %v32_v12 }
  0x30   :  { %323 = vmatprep.subr.mxu0 %v31_v13 }
  0x33   :  { %324 = vmatpush3.xpose.msra.mxu0 %v31_v13 }
  0x34   :  { %325 = vmatprep.subr.mxu0 %v30_v14 }
  0x37   :  { %326 = vmatpush3.xpose.msra.mxu0 %v30_v14 }
  0x38   :  { %327 = vmatprep.subr.mxu0 %v29_v15 }
  0x3b   :  { %328 = vmatpush3.xpose.msra.mxu0 %v29_v15 }
  0x3c   :  { %329 = vmatprep.subr.mxu0 %v28_v16 }
  0x3f   :  { %330 = vmatpush3.xpose.msra.mxu0 %v28_v16 }
  0x42   :  { %332 = vmatmul.mubr.f32.vlgmr.msra.gmra.mxu0 %v27_v17 }
 0x102   :  { %v333_v35 = vpop.f32.mrf.mxu0 }
 0x103   :  { %v123_v36 = vadd.f32 %v333_v35, %v261_v34 }
 0x104   :  { %v117_v37 = vpop.f32.mrf.mxu0 }
 0x105   :  { %v129_v38 = vmul.f32 %v123_v36, %v123_v36  ;;  %v118_v39 = vadd.f32 %v261_v34, %v117_v37  ;;  %v127_v54 = vmul.f32 0.5, %v123_v36 }
 0x107   :  { %v131_v40 = vmul.f32 %v129_v38, %v123_v36  ;;  %v128_v41 = vmul.f32 %v118_v39, %v118_v39  ;;  %v126_v52 = vmul.f32 0.5, %v118_v39 }
 0x109   :  { %v133_v42 = vmul.f32 0.044715, %v131_v40  ;;  %v130_v43 = vmul.f32 %v128_v41, %v118_v39 }
 0x10b   :  { %v135_v44 = vadd.f32 %v133_v42, %v123_v36  ;;  %v132_v45 = vmul.f32 0.044715, %v130_v43 }
 0x10d   :  { %v137_v46 = vmul.f32 0.7978846, %v135_v44  ;;  %v134_v47 = vadd.f32 %v132_v45, %v118_v39 }
 0x10f   :  { %v136_v48 = vmul.f32 0.7978846, %v134_v47  ;;  %369 = vtanh.f32 %v137_v46 }
 0x111   :  { %371 = vtanh.f32 %v136_v48 }
 0x11c   :  { %v370_v49 = vpop.eup %369 }
 0x11d   :  { %v141_v51 = vadd.f32 1.0, %v370_v49 }
 0x11e   :  { %v372_v50 = vpop.eup %371 }
 0x11f   :  { %v140_v53 = vadd.f32 1.0, %v372_v50  ;;  %v143_v56 = vmul.f32 %v141_v51, %v127_v54 }
 0x121   :  { %v142_v55 = vmul.f32 %v140_v53, %v126_v52 }
 0x123   :  { %366 = vmatprep.mubr.f32.mxu1 %v142_v55 }
 0x124   :  { %367 = vmatmul.mubr.f32.vlgmr.msra.gmra.mxu1 %v143_v56 }
 0x1e4   :  { %v368_v58 = vpop.f32.mrf.mxu1 }
 0x1e5   :  { %v254_v59 = vadd.f32 %v368_v58, %v262_v57 }
 0x1e6   :  { %v228_v60 = vpop.f32.mrf.mxu1 }
 0x1e7   :  { %256 = vst [vmem:[%s522_s5 + $0x8] sm:$0xff] %v254_v59  ;;  %v253_v61 = vadd.f32 %v262_v57, %v228_v60 }
 0x1e9   :  { %255 = vst [vmem:[%s522_s5] sm:$0xff] %v253_v61 }

</bundles_post_ra>
